<compile_context>
chip_gen: v7x
topology: tpu7x:2x2x1
jax: 0.10.0
libtpu: 0.0.40
codegen_flags: <defaults>
</compile_context>

<pallas_src>
import math

import jax
import jax.numpy as jnp
from jax.experimental import pallas as pl
from jax.experimental.pallas import tpu as pltpu

_MIB = 1024 * 1024


def _sublane_multiple(dtypes):
    """LCM of sublane packing for the dtypes present (8 f32 / 16 bf16 / 32 i8)."""
    m = 8
    for dt in dtypes:
        itemsize = max(1, jnp.dtype(dt).itemsize)
        m = max(m, min(32, 32 // itemsize))
    return m


def _vmem_budget():
    """Generation-aware scoped-VMEM limit and per-step tile budget (bytes)."""
    cap = 64 * _MIB  # conservative default if the query fails
    try:
        info = pltpu.get_tpu_info()
        cap = int(getattr(info, "vmem_capacity_bytes", cap))
    except Exception:
        pass
    # ~75% of physical VMEM, capped at 64 MiB: ~64 MiB on v5e/v6e (128 MiB
    # physical), ~48 MiB on v7x (64 MiB physical).
    vmem_limit = min((cap * 3) // 4, 64 * _MIB)
    # Headroom for Mosaic internal scratch; bytes_per_row below already counts
    # the double-buffering factor.
    tile_budget = (vmem_limit * 2) // 3
    return vmem_limit, tile_budget


def _make_concat_kernel(inner_sizes, dma_flags, tile_rows, rows, out_dtype):
    """Build the kernel. refs = (*in_refs, out_ref[, dma_sem])."""
    num_dma = int(sum(dma_flags))
    num_full = rows // tile_rows
    remainder = rows % tile_rows

    def kernel(*refs):
        if num_dma:
            in_refs, out_ref, sem = refs[:-2], refs[-2], refs[-1]
        else:
            in_refs, out_ref = refs[:-1], refs[-1]
            sem = None

        r = pl.program_id(0)
        row_start = r * tile_rows

        # --- VPU path: dtype-mismatched inputs are staged through VMEM tiles
        #     by BlockSpec pipelining and cast + stored into their slab.
        offset = 0
        for ref, inner, is_dma in zip(in_refs, inner_sizes, dma_flags):
            if not is_dma:
                out_ref[:, offset:offset + inner] = ref[...].astype(out_dtype)
            offset += inner

        # --- DMA path: same-dtype inputs go HBM -> output slab directly
        #     (no VMEM staging copy, no vector load/store on the critical path).
        if num_dma:
            def issue_copies(n_rows):
                copies = []
                off = 0
                sem_idx = 0
                for ref, inner, is_dma in zip(in_refs, inner_sizes, dma_flags):
                    if is_dma:
                        cp = pltpu.make_async_copy(
                            ref.at[pl.ds(row_start, n_rows), :],
                            out_ref.at[pl.ds(0, n_rows), off:off + inner],
                            sem.at[sem_idx],
                        )
                        cp.start()
                        copies.append(cp)
                        sem_idx += 1
                    off += inner
                for cp in copies:
                    cp.wait()

            if remainder == 0:
                issue_copies(tile_rows)
            else:
                @pl.when(r < num_full)
                def _():
                    issue_copies(tile_rows)

                @pl.when(r == num_full)
                def _():
                    issue_copies(remainder)

    return kernel


def pallas_concat(args, axis, *, force_pallas=False):
    """Equivalent of torch.cat(args, axis), Pallas-backed when it pays off."""
    args = list(args)
    out_dtype = jnp.result_type(*[a.dtype for a in args])
    if len(args) == 1:
        return args[0].astype(out_dtype)

    ndim = args[0].ndim
    axis = axis % ndim  # normalize negative axes (PyTorch convention)
    shapes = [a.shape for a in args]
    out_shape_nd = list(shapes[0])
    out_shape_nd[axis] = sum(s[axis] for s in shapes)
    out_shape_nd = tuple(out_shape_nd)

    def _xla_fallback():
        return jnp.concatenate([a.astype(out_dtype) for a in args], axis=axis)

    # torch.cat allows zero-size operands along `axis`; a 0-width block is not
    # expressible, so defer to XLA.
    if any(s[axis] == 0 for s in shapes):
        return _xla_fallback()

    lead = shapes[0][:axis]
    tail = shapes[0][axis + 1:]
    rows = math.prod(lead) if lead else 1
    tail_n = math.prod(tail) if tail else 1
    inner_sizes = [s[axis] * tail_n for s in shapes]
    total_inner = sum(inner_sizes)
    if rows == 0 or total_inner == 0:
        return _xla_fallback()

    out_itemsize = jnp.dtype(out_dtype).itemsize
    total_out_bytes = rows * total_inner * out_itemsize
    total_in_bytes = sum(a.size * jnp.dtype(a.dtype).itemsize for a in args)

    # Dispatch fast path: tiny or lane-sparse outputs lose to native concat
    # (pallas_call fixed overhead + masked narrow stores).
    if not force_pallas and (total_out_bytes < 2 * _MIB or total_inner < 128):
        return _xla_fallback()

    # Lane-dense 2-D view: (rows, concat_dim * tail); concat along lanes.
    args_2d = [a.reshape(rows, inner) for a, inner in zip(args, inner_sizes)]
    # Same-dtype inputs bypass VMEM staging: direct HBM -> output-slab DMA.
    dma_flags = [bool(a.dtype == out_dtype) for a in args]

    vmem_limit, tile_budget = _vmem_budget()
    # Per-row VMEM: double-buffered output tile + double-buffered tiles of the
    # (rare) dtype-mismatched inputs. DMA-path inputs need no staging VMEM.
    bytes_per_row = 2 * total_inner * out_itemsize
    for a, inner, is_dma in zip(args, inner_sizes, dma_flags):
        if not is_dma:
            bytes_per_row += 2 * inner * jnp.dtype(a.dtype).itemsize

    sublane = _sublane_multiple([a.dtype for a in args] + [out_dtype])
    max_rows_in_budget = tile_budget // max(bytes_per_row, 1)
    if max_rows_in_budget < min(sublane, rows):
        # Degenerate very-wide inner axis: even one minimal tile busts VMEM.
        # TODO(synk): tile the lane axis (per input, multiples of 128) instead
        # of deferring to XLA here.
        return _xla_fallback()

    tile_rows = int(max_rows_in_budget)
    min_steps = 4  # >=4 grid steps: DMA/writeback pipelining + v7x 2-TC split
    if rows > min_steps * sublane:
        tile_rows = min(tile_rows, pl.cdiv(rows, min_steps))
    if tile_rows >= rows:
        tile_rows = rows  # full extent is always a legal block dim
    else:
        tile_rows = max(sublane, (tile_rows // sublane) * sublane)

    grid = (pl.cdiv(rows, tile_rows),)

    in_specs = []
    for inner, is_dma in zip(inner_sizes, dma_flags):
        if is_dma:
            in_specs.append(pl.BlockSpec(memory_space=pl.ANY))
        else:
            in_specs.append(pl.BlockSpec((tile_rows, inner), lambda r: (r, 0)))
    out_specs = pl.BlockSpec((tile_rows, total_inner), lambda r: (r, 0))

    num_dma = int(sum(dma_flags))
    scratch_shapes = ((pltpu.SemaphoreType.DMA((num_dma,)),) if num_dma else ())

    kernel = _make_concat_kernel(
        tuple(inner_sizes), tuple(dma_flags), tile_rows, rows, out_dtype)

    out_2d = pl.pallas_call(
        kernel,
        out_shape=jax.ShapeDtypeStruct((rows, total_inner), out_dtype),
        grid=grid,
        in_specs=in_specs,
        out_specs=out_specs,
        scratch_shapes=scratch_shapes,
        compiler_params=pltpu.CompilerParams(
            dimension_semantics=("parallel",),
            vmem_limit_bytes=vmem_limit,
        ),
        cost_estimate=pl.CostEstimate(
            flops=0,
            transcendentals=0,
            bytes_accessed=total_in_bytes + total_out_bytes,
        ),
    )(*args_2d)

    return out_2d.reshape(out_shape_nd)


if __name__ == "__main__":
    key = jax.random.PRNGKey(0)
    k0, k1, k2, k3, k4, k5, k6, k7, k8 = jax.random.split(key, 9)

    # Test 1: NCHW channel concat (axis=1), the typical ONNX Concat node.
    # H*W = 256 -> every slab offset is a multiple of 128 (lane-dense);
    # all inputs match the output dtype -> pure direct-DMA path.
    x0 = jax.random.normal(k0, (2, 4, 16, 16), dtype=jnp.float32)
    x1 = jax.random.normal(k1, (2, 6, 16, 16), dtype=jnp.float32)
    x2 = jax.random.normal(k2, (2, 2, 16, 16), dtype=jnp.float32)
    out = jax.block_until_ready(pallas_concat([x0, x1, x2], 1, force_pallas=True))
    ref = jnp.concatenate([x0, x1, x2], axis=1)
    assert out.shape == ref.shape and out.dtype == ref.dtype
    assert jnp.array_equal(out, ref), "test 1 mismatch"

    # Test 2: negative axis + mixed dtypes: the f32 input takes the DMA path,
    # the bf16 input is staged through VMEM and cast in-kernel.
    y0 = jax.random.normal(k3, (2, 8, 128), dtype=jnp.float32)
    y1 = jax.random.normal(k4, (2, 8, 128), dtype=jnp.bfloat16)
    out2 = jax.block_until_ready(pallas_concat([y0, y1], -1, force_pallas=True))
    ref2 = jnp.concatenate([y0, y1], axis=-1)
    assert out2.shape == ref2.shape and out2.dtype == ref2.dtype
    assert jnp.array_equal(out2, ref2), "test 2 mismatch"

    # Test 3: multi-step grid with a partial last row-tile (72 rows, 16-row
    # tiles -> 5 steps) to exercise the pipelined + remainder DMA branches.
    z0 = jax.random.normal(k5, (2, 36, 8, 128), dtype=jnp.float32)
    z1 = jax.random.normal(k6, (2, 36, 8, 128), dtype=jnp.float32)
    out3 = jax.block_until_ready(pallas_concat([z0, z1], 2, force_pallas=True))
    ref3 = jnp.concatenate([z0, z1], axis=2)
    assert out3.shape == ref3.shape and out3.dtype == ref3.dtype
    assert jnp.array_equal(out3, ref3), "test 3 mismatch"

    # Test 4: tiny / lane-sparse shapes dispatch to the XLA-native fast path.
    w0 = jax.random.normal(k7, (2, 3, 4), dtype=jnp.float32)
    w1 = jax.random.normal(k8, (2, 5, 4), dtype=jnp.float32)
    out4 = jax.block_until_ready(pallas_concat([w0, w1], 1))
    ref4 = jnp.concatenate([w0, w1], axis=1)
    assert jnp.array_equal(out4, ref4), "test 4 mismatch"

    print("KERNEL_OK")
</pallas_src>

<mosaic_0001>
module attributes {stable_mosaic.version = 11 : i64} {
  func.func @kernel(%arg0: i32, %arg1: memref<2x1024xf32, #tpu.memory_space<any>>, %arg2: memref<2x1536xf32, #tpu.memory_space<any>>, %arg3: memref<2x512xf32, #tpu.memory_space<any>>, %arg4: memref<2x3072xf32, #tpu.memory_space<vmem>>, %arg5: memref<3x!tpu.dma_semaphore, #tpu.memory_space<semaphore_mem>>) attributes {dimension_semantics = [#tpu.dimension_semantics<parallel>], iteration_bounds = array<i64: 1>, scalar_prefetch = 0 : i64, scratch_operands = 1 : i64, tpu.core_type = #tpu.core_type<tc>, window_params = [{}, {}, {}, {transform_indices = @transform_3, window_bounds = array<i64: 2, 3072>}]} {
    %c2_i32 = arith.constant 2 : i32
    %0 = arith.muli %arg0, %c2_i32 : i32
    %c0_i32 = arith.constant 0 : i32
    %c0_i32_0 = arith.constant 0 : i32
    %1 = tpu.memref_slice %arg1[%0, %c0_i32_0] : memref<2x1024xf32, #tpu.memory_space<any>> -> memref<2x1024xf32, #tpu.memory_space<any>>
    %c0_i32_1 = arith.constant 0 : i32
    %c0_i32_2 = arith.constant 0 : i32
    %2 = tpu.memref_slice %arg4[%c0_i32_1, %c0_i32_2] : memref<2x3072xf32, #tpu.memory_space<vmem>> -> memref<2x1024xf32, #tpu.memory_space<vmem>>
    %3 = tpu.memref_slice %arg5[%c0_i32] : memref<3x!tpu.dma_semaphore, #tpu.memory_space<semaphore_mem>> -> memref<1x!tpu.dma_semaphore, #tpu.memory_space<semaphore_mem>>
    %4 = tpu.memref_squeeze %3 : memref<1x!tpu.dma_semaphore, #tpu.memory_space<semaphore_mem>> -> memref<!tpu.dma_semaphore, #tpu.memory_space<semaphore_mem>>
    tpu.enqueue_dma source(%1 : memref<2x1024xf32, #tpu.memory_space<any>>) target(%2 : memref<2x1024xf32, #tpu.memory_space<vmem>>) target_semaphore(%4 : memref<!tpu.dma_semaphore, #tpu.memory_space<semaphore_mem>>)
    %c1_i32 = arith.constant 1 : i32
    %c0_i32_3 = arith.constant 0 : i32
    %5 = tpu.memref_slice %arg2[%0, %c0_i32_3] : memref<2x1536xf32, #tpu.memory_space<any>> -> memref<2x1536xf32, #tpu.memory_space<any>>
    %c0_i32_4 = arith.constant 0 : i32
    %c1024_i32 = arith.constant 1024 : i32
    %6 = tpu.memref_slice %arg4[%c0_i32_4, %c1024_i32] : memref<2x3072xf32, #tpu.memory_space<vmem>> -> memref<2x1536xf32, #tpu.memory_space<vmem>>
    %7 = tpu.memref_slice %arg5[%c1_i32] : memref<3x!tpu.dma_semaphore, #tpu.memory_space<semaphore_mem>> -> memref<1x!tpu.dma_semaphore, #tpu.memory_space<semaphore_mem>>
    %8 = tpu.memref_squeeze %7 : memref<1x!tpu.dma_semaphore, #tpu.memory_space<semaphore_mem>> -> memref<!tpu.dma_semaphore, #tpu.memory_space<semaphore_mem>>
    tpu.enqueue_dma source(%5 : memref<2x1536xf32, #tpu.memory_space<any>>) target(%6 : memref<2x1536xf32, #tpu.memory_space<vmem>>) target_semaphore(%8 : memref<!tpu.dma_semaphore, #tpu.memory_space<semaphore_mem>>)
    %c2_i32_5 = arith.constant 2 : i32
    %c0_i32_6 = arith.constant 0 : i32
    %9 = tpu.memref_slice %arg3[%0, %c0_i32_6] : memref<2x512xf32, #tpu.memory_space<any>> -> memref<2x512xf32, #tpu.memory_space<any>>
    %c0_i32_7 = arith.constant 0 : i32
    %c2560_i32 = arith.constant 2560 : i32
    %10 = tpu.memref_slice %arg4[%c0_i32_7, %c2560_i32] : memref<2x3072xf32, #tpu.memory_space<vmem>> -> memref<2x512xf32, #tpu.memory_space<vmem>>
    %11 = tpu.memref_slice %arg5[%c2_i32_5] : memref<3x!tpu.dma_semaphore, #tpu.memory_space<semaphore_mem>> -> memref<1x!tpu.dma_semaphore, #tpu.memory_space<semaphore_mem>>
    %12 = tpu.memref_squeeze %11 : memref<1x!tpu.dma_semaphore, #tpu.memory_space<semaphore_mem>> -> memref<!tpu.dma_semaphore, #tpu.memory_space<semaphore_mem>>
    tpu.enqueue_dma source(%9 : memref<2x512xf32, #tpu.memory_space<any>>) target(%10 : memref<2x512xf32, #tpu.memory_space<vmem>>) target_semaphore(%12 : memref<!tpu.dma_semaphore, #tpu.memory_space<semaphore_mem>>)
    %c0_i32_8 = arith.constant 0 : i32
    %c0_i32_9 = arith.constant 0 : i32
    %13 = tpu.memref_slice %arg1[%0, %c0_i32_9] : memref<2x1024xf32, #tpu.memory_space<any>> -> memref<2x1024xf32, #tpu.memory_space<any>>
    %c0_i32_10 = arith.constant 0 : i32
    %c0_i32_11 = arith.constant 0 : i32
    %14 = tpu.memref_slice %arg4[%c0_i32_10, %c0_i32_11] : memref<2x3072xf32, #tpu.memory_space<vmem>> -> memref<2x1024xf32, #tpu.memory_space<vmem>>
    %15 = tpu.memref_slice %arg5[%c0_i32_8] : memref<3x!tpu.dma_semaphore, #tpu.memory_space<semaphore_mem>> -> memref<1x!tpu.dma_semaphore, #tpu.memory_space<semaphore_mem>>
    %16 = tpu.memref_squeeze %15 : memref<1x!tpu.dma_semaphore, #tpu.memory_space<semaphore_mem>> -> memref<!tpu.dma_semaphore, #tpu.memory_space<semaphore_mem>>
    tpu.wait_dma2 semaphore(%16 : memref<!tpu.dma_semaphore, #tpu.memory_space<semaphore_mem>>) src(%13 : memref<2x1024xf32, #tpu.memory_space<any>>) dst(%14 : memref<2x1024xf32, #tpu.memory_space<vmem>>)
    %c1_i32_12 = arith.constant 1 : i32
    %c0_i32_13 = arith.constant 0 : i32
    %17 = tpu.memref_slice %arg2[%0, %c0_i32_13] : memref<2x1536xf32, #tpu.memory_space<any>> -> memref<2x1536xf32, #tpu.memory_space<any>>
    %c0_i32_14 = arith.constant 0 : i32
    %c1024_i32_15 = arith.constant 1024 : i32
    %18 = tpu.memref_slice %arg4[%c0_i32_14, %c1024_i32_15] : memref<2x3072xf32, #tpu.memory_space<vmem>> -> memref<2x1536xf32, #tpu.memory_space<vmem>>
    %19 = tpu.memref_slice %arg5[%c1_i32_12] : memref<3x!tpu.dma_semaphore, #tpu.memory_space<semaphore_mem>> -> memref<1x!tpu.dma_semaphore, #tpu.memory_space<semaphore_mem>>
    %20 = tpu.memref_squeeze %19 : memref<1x!tpu.dma_semaphore, #tpu.memory_space<semaphore_mem>> -> memref<!tpu.dma_semaphore, #tpu.memory_space<semaphore_mem>>
    tpu.wait_dma2 semaphore(%20 : memref<!tpu.dma_semaphore, #tpu.memory_space<semaphore_mem>>) src(%17 : memref<2x1536xf32, #tpu.memory_space<any>>) dst(%18 : memref<2x1536xf32, #tpu.memory_space<vmem>>)
    %c2_i32_16 = arith.constant 2 : i32
    %c0_i32_17 = arith.constant 0 : i32
    %21 = tpu.memref_slice %arg3[%0, %c0_i32_17] : memref<2x512xf32, #tpu.memory_space<any>> -> memref<2x512xf32, #tpu.memory_space<any>>
    %c0_i32_18 = arith.constant 0 : i32
    %c2560_i32_19 = arith.constant 2560 : i32
    %22 = tpu.memref_slice %arg4[%c0_i32_18, %c2560_i32_19] : memref<2x3072xf32, #tpu.memory_space<vmem>> -> memref<2x512xf32, #tpu.memory_space<vmem>>
    %23 = tpu.memref_slice %arg5[%c2_i32_16] : memref<3x!tpu.dma_semaphore, #tpu.memory_space<semaphore_mem>> -> memref<1x!tpu.dma_semaphore, #tpu.memory_space<semaphore_mem>>
    %24 = tpu.memref_squeeze %23 : memref<1x!tpu.dma_semaphore, #tpu.memory_space<semaphore_mem>> -> memref<!tpu.dma_semaphore, #tpu.memory_space<semaphore_mem>>
    tpu.wait_dma2 semaphore(%24 : memref<!tpu.dma_semaphore, #tpu.memory_space<semaphore_mem>>) src(%21 : memref<2x512xf32, #tpu.memory_space<any>>) dst(%22 : memref<2x512xf32, #tpu.memory_space<vmem>>)
    return
  }
  func.func @transform_3(%arg0: i32) -> (i32, i32) {
    %c0_i32 = arith.constant 0 : i32
    %c0_i32_0 = arith.constant 0 : i32
    return %arg0, %c0_i32 : i32, i32
  }
}

</mosaic_0001>

<bundles_post_ra>
// kernel: tpu_custom_call.1
= control target key start
LH: loop header
LB: loop body
LE: loop exit
PB: predicated region body
PF: predicated region fallthrough
CT: control target
= control target key end

     0   :  { %8 = vsyncpa [#allocation4], 0  ;;  %s210_s12 = smov [#allocation3]   ;;  %s211_s14 = smov [#allocation3 + $0x10]   ;;  %s307_s0 = inlined_call_operand.hbm [shape: f32[2,1024], index: 0, kind: input, shape index: {}]   ;;  %s308_s1 = inlined_call_operand.hbm [shape: f32[2,1536], index: 1, kind: input, shape index: {}]   ;;  %s309_s2 = inlined_call_operand.hbm [shape: f32[2,512], index: 2, kind: input, shape index: {}]   ;;  %s310_s3 = inlined_call_operand.hbm [shape: f32[2,3072], index: 3, kind: output, shape index: {}]  }
   0x1   :  { %s22_s13 = sshll.u32 %s210_s12, 4  ;;  %s38_s15 = sshll.u32 %s211_s14, 4  ;;  %s233_s13 = int_to_ptr.vmem [resolvable:$true] %s22_s13  ;;  %s39_s15 = int_to_ptr.vmem [resolvable:$true] %s38_s15 }
   0x2   :  { %s114_s18 = scalar_lea.hbm %s307_s0, 256 }
   0x3   :  { %p115_p0 = scmp.ne.s32.totalorder %s307_s0, %s114_s18  ;;  %p118_p1 = scmp.lt.u32.totalorder %s114_s18, %s307_s0 }
   0x5   :  { %p120_p2 = pnand %p118_p1, %p115_p0 }
   0x7   :  { %123 = shalt.err (!%p120_p2)  }
   0x8   :  { %s124_s23 = scalar_lea.vmem %s233_s13, 256  ;;  %s247_s24 = scalar_lea.vmem %s233_s13, 768 }
   0x9   :  { %p125_p3 = scmp.ne.s32.totalorder %s233_s13, %s124_s23  ;;  %p129_p4 = scmp.lt.s32.totalorder %s233_s13, %s233_s13 }
   0xa   :  { %p130_p5 = scmp.lt.s32.totalorder %s247_s24, %s124_s23 }
   0xc   :  { %p131_p6 = por %p130_p5, %p129_p4 }
   0xe   :  { %p132_p7 = pnand %p131_p6, %p125_p3 }
  0x10   :  { %135 = shalt.err (!%p132_p7)  }
  0x11   :  { %25 = dma.hbm_to_vmem [thread:$0]  %s307_s0, 256, %s233_s13, [#allocation2] }
  0x12   :  { %s136_s29 = scalar_lea.hbm %s308_s1, 384 }
  0x13   :  { %p137_p8 = scmp.ne.s32.totalorder %s308_s1, %s136_s29  ;;  %p140_p9 = scmp.lt.u32.totalorder %s136_s29, %s308_s1 }
  0x15   :  { %p142_p10 = pnand %p140_p9, %p137_p8 }
  0x17   :  { %145 = shalt.err (!%p142_p10)  }
  0x18   :  { %s146_s7 = scalar_lea.vmem %s39_s15, 384  ;;  %p151_p12 = scmp.lt.s32.totalorder %s39_s15, %s233_s13 }
  0x19   :  { %p147_p11 = scmp.ne.s32.totalorder %s39_s15, %s146_s7  ;;  %p152_p13 = scmp.lt.s32.totalorder %s247_s24, %s146_s7 }
  0x1b   :  { %p153_p0 = por %p152_p13, %p151_p12 }
  0x1d   :  { %p154_p1 = pnand %p153_p0, %p147_p11 }
  0x1f   :  { %157 = shalt.err (!%p154_p1)  }
  0x20   :  { %41 = dma.hbm_to_vmem [thread:$0]  %s308_s1, 384, %s39_s15, [#allocation2 + $0x1] }
  0x21   :  { %s212_s9 = smov [#allocation3 + $0x28]   ;;  %s158_s14 = scalar_lea.hbm %s309_s2, 128 }
  0x22   :  { %s54_s10 = sshll.u32 %s212_s9, 4  ;;  %p159_p2 = scmp.ne.s32.totalorder %s309_s2, %s158_s14  ;;  %s55_s10 = int_to_ptr.vmem [resolvable:$true] %s54_s10 }
  0x23   :  { %p162_p3 = scmp.lt.u32.totalorder %s158_s14, %s309_s2 }
  0x25   :  { %p164_p5 = pnand %p162_p3, %p159_p2 }
  0x27   :  { %167 = shalt.err (!%p164_p5)  }
  0x28   :  { %s168_s20 = scalar_lea.vmem %s55_s10, 128  ;;  %p173_p7 = scmp.lt.s32.totalorder %s55_s10, %s233_s13 }
  0x29   :  { %p169_p6 = scmp.ne.s32.totalorder %s55_s10, %s168_s20  ;;  %p174_p8 = scmp.lt.s32.totalorder %s247_s24, %s168_s20 }
  0x2b   :  { %p175_p9 = por %p174_p8, %p173_p7 }
  0x2d   :  { %p176_p10 = pnand %p175_p9, %p169_p6 }
  0x2f   :  { %179 = shalt.err (!%p176_p10)  }
  0x30   :  { %57 = dma.hbm_to_vmem [thread:$0]  %s309_s2, 128, %s55_s10, [#allocation2 + $0x2] }
  0x31   :  { %202 = dma.done.wait [#allocation2], 256 }
  0x32   :  { %203 = vsyncadd [#allocation2], 4294967040 }
  0x33   :  { %204 = dma.done.wait [#allocation2 + $0x1], 384 }
  0x34   :  { %205 = vsyncadd [#allocation2 + $0x1], 4294966912 }
  0x35   :  { %206 = dma.done.wait [#allocation2 + $0x2], 128 }
  0x36   :  { %207 = vsyncadd [#allocation2 + $0x2], 4294967168  ;;  %p181_p11 = scmp.ne.s32.totalorder %s233_s13, %s247_s24  ;;  %p186_p12 = scmp.lt.s32.totalorder %s247_s24, %s247_s24 }
  0x38   :  { %p187_p13 = por %p186_p12, %p129_p4 }
  0x3a   :  { %p188_p0 = pnand %p187_p13, %p181_p11 }
  0x3c   :  { %191 = shalt.err (!%p188_p0)
}
  0x3d   :  { %s192_s22 = scalar_lea.hbm %s310_s3, 768 }
  0x3e   :  { %p193_p1 = scmp.ne.s32.totalorder %s310_s3, %s192_s22  ;;  %p196_p2 = scmp.lt.u32.totalorder %s192_s22, %s310_s3 }
  0x40   :  { %p198_p3 = pnand %p196_p2, %p193_p1 }
  0x42   :  { %201 = shalt.err (!%p198_p3)
}
  0x43   :  { %77 = dma.vmem_to_hbm [thread:$0]  %s233_s13, 768, %s310_s3, [#allocation4]  }
  0x44   :  { %208 = dma.done.wait [#allocation4], 768  }
  0x45   :  { %209 = vsyncadd [#allocation4], 4294966528 }
  0x46   :  { %81 = vsyncpa [#allocation4], 1 }
  0x47   :  { %82 = vsyncmov [#allocation2] }
  0x4a   :  { %s83_s29 = vpop.sfrf %82 }
  0x4b   :  { %p108_p4 = scmp.ne.s32.totalorder %s83_s29, 0 }
  0x4d   :  { %87 = shalt.err (%p108_p4)  }
  0x4e   :  { %89 = vsyncmov [#allocation2 + $0x1] }
  0x51   :  { %s90_s30 = vpop.sfrf %89 }
  0x52   :  { %p109_p5 = scmp.ne.s32.totalorder %s90_s30, 0 }
  0x54   :  { %94 = shalt.err (%p109_p5)  }
  0x55   :  { %96 = vsyncmov [#allocation2 + $0x2] }
  0x58   :  { %s97_s4 = vpop.sfrf %96 }
  0x59   :  { %p110_p6 = scmp.ne.s32.totalorder %s97_s4, 0 }
  0x5b   :  { %101 = shalt.err (%p110_p6)  }

</bundles_post_ra>
